<compile_context>
chip_gen: v7x
topology: tpu7x:2x2x1
jax: 0.10.0
libtpu: 0.0.40
codegen_flags: <defaults>
</compile_context>

<pallas_src>
import jax
import jax.numpy as jnp
from jax.experimental import pallas as pl
from jax.experimental.pallas import tpu as pltpu


def _select_linear_kernel(choice_ref, x_ref, w_ref, o_ref):
    # All refs are SMEM scalars / tiny 1-D arrays.
    #   choice_ref: (1,) int32   -- the branch selector (1, 2 or 3)
    #   x_ref:      (1,) float32 -- Tensor([1]) input
    #   w_ref:      (3,) float32 -- flattened weights of choice1/2/3
    #   o_ref:      (1,) float32 -- output
    idx = jnp.clip(choice_ref[0] - 1, 0, 2)      # in-kernel guard for dynamic choice
    # Linear(1, 1, bias=False) on a length-1 input: y = x * w (scalar multiply).
    o_ref[0] = x_ref[0] * w_ref[idx]


_SMEM_SPEC = pl.BlockSpec(memory_space=pltpu.MemorySpace.SMEM)

# Build the pallas_call once; shapes are static so it is reused for every call.
_select_linear = pl.pallas_call(
    _select_linear_kernel,
    out_shape=jax.ShapeDtypeStruct((1,), jnp.float32),
    in_specs=[_SMEM_SPEC, _SMEM_SPEC, _SMEM_SPEC],
    out_specs=_SMEM_SPEC,
    cost_estimate=pl.CostEstimate(flops=1, transcendentals=0, bytes_accessed=24),
)


@jax.jit
def _forward_jit(choice_arr: jax.Array, weights: jax.Array) -> jax.Array:
    x = jnp.ones((1,), dtype=jnp.float32)                     # Tensor([1])
    w_flat = jnp.reshape(weights.astype(jnp.float32), (3,))   # keep SMEM tiny (1-D)
    return _select_linear(choice_arr, x, w_flat)


def minimal_conditional_forward(choice: int, weights: jax.Array) -> jax.Array:
    """Forward pass of MinimalConditionalModel.

    Args:
      choice: Python int in {1, 2, 3} (mirrors the torch module's `input: int`).
      weights: (3, 1, 1) float32 stacked weights of choice1/choice2/choice3.

    Returns:
      (1,) float32 array, same as `self.choiceN(Tensor([1]))` in torch.
    """
    if choice not in (1, 2, 3):
        raise Exception('Invalid input:', choice)
    choice_arr = jnp.asarray([choice], dtype=jnp.int32)
    return _forward_jit(choice_arr, weights)  # (1,)


def loss(output: jax.Array, target: jax.Array) -> jax.Array:
    # Mirrors MinimalConditionalModel.loss; trivial elementwise op, kept in plain JAX.
    return (output - target) * (output - target)


if __name__ == "__main__":
    key = jax.random.PRNGKey(0)

    # nn.init.constant_(weight, 0) for all three Linear(1,1,bias=False) layers.
    weights = jnp.zeros((3, 1, 1), dtype=jnp.float32)

    for choice in (1, 2, 3):
        y = jax.block_until_ready(minimal_conditional_forward(choice, weights))
        assert y.shape == (1,)
        assert float(y[0]) == 0.0

    # Extra selection-correctness check with deterministic non-zero weights.
    rnd_weights = jax.random.normal(key, (3, 1, 1), dtype=jnp.float32)
    for choice in (1, 2, 3):
        y = jax.block_until_ready(minimal_conditional_forward(choice, rnd_weights))
        ref = float(rnd_weights[choice - 1, 0, 0])   # x == 1 so y == selected weight
        assert abs(float(y[0]) - ref) < 1e-6, (choice, float(y[0]), ref)

    # loss() sanity check.
    l = jax.block_until_ready(loss(jnp.asarray([2.0]), jnp.asarray([0.5])))
    assert abs(float(l[0]) - 2.25) < 1e-6

    # Invalid input must raise, matching the torch module.
    try:
        minimal_conditional_forward(4, weights)
        raise AssertionError("expected Exception for invalid input")
    except AssertionError:
        raise
    except Exception as e:  # noqa: BLE001
        assert "Invalid input" in str(e)

    print("KERNEL_OK")
</pallas_src>

<mosaic_0001>
module attributes {stable_mosaic.version = 11 : i64} {
  func.func @_select_linear_kernel(%arg0: memref<1xi32, #tpu.memory_space<smem>>, %arg1: memref<1xf32, #tpu.memory_space<smem>>, %arg2: memref<3xf32, #tpu.memory_space<smem>>, %arg3: memref<1xf32, #tpu.memory_space<smem>>) attributes {dimension_semantics = [], scalar_prefetch = 0 : i64, scratch_operands = 0 : i64, tpu.core_type = #tpu.core_type<tc>} {
    %c0 = arith.constant 0 : index
    %0 = memref.load %arg0[%c0] : memref<1xi32, #tpu.memory_space<smem>>
    %c1_i32 = arith.constant 1 : i32
    %1 = arith.subi %0, %c1_i32 : i32
    %c0_i32 = arith.constant 0 : i32
    %c2_i32 = arith.constant 2 : i32
    %2 = arith.maxsi %c0_i32, %1 : i32
    %3 = arith.minsi %c2_i32, %2 : i32
    %c0_0 = arith.constant 0 : index
    %4 = memref.load %arg1[%c0_0] : memref<1xf32, #tpu.memory_space<smem>>
    %5 = arith.index_cast %3 : i32 to index
    %6 = memref.load %arg2[%5] : memref<3xf32, #tpu.memory_space<smem>>
    %7 = arith.mulf %4, %6 : f32
    %c0_1 = arith.constant 0 : index
    %8 = memref.load %arg3[%c0_1] : memref<1xf32, #tpu.memory_space<smem>>
    memref.store %7, %arg3[%c0_1] : memref<1xf32, #tpu.memory_space<smem>>
    return
  }
}

</mosaic_0001>

<bundles_post_ra>
// kernel: _forward_jit.1
= control target key start
LH: loop header
LB: loop body
LE: loop exit
PB: predicated region body
PF: predicated region fallthrough
CT: control target
= control target key end

     0   :  { %10 = vsyncpa [#allocation6], 0  ;;  %s134_s0 = inlined_call_operand.<no memory space> [shape: s32[1], index: 0, kind: input, shape index: {}]   ;;  %s135_s1 = inlined_call_operand.<no memory space> [shape: f32[1], index: 1, kind: input, shape index: {}]   ;;  %s136_s2 = inlined_call_operand.vmem [shape: f32[3], index: 2, kind: input, shape index: {}]   ;;  %s137_s3 = inlined_call_operand.hbm [shape: f32[1], index: 3, kind: output, shape index: {}]  }
   0x1   :  { %11 = vsyncpa [#allocation5], 0  ;;  %s22_s14 = sshll.u32 %s136_s2, 4  ;;  %s23_s14 = int_to_ptr.vmem [resolvable:$true] %s22_s14 }
   0x2   :  { %s65_s15 = scalar_lea.vmem %s23_s14, 16  ;;  %p70_p1 = scmp.lt.s32.totalorder %s23_s14, %s23_s14 }
   0x3   :  { %p66_p0 = scmp.ne.s32.totalorder %s23_s14, %s65_s15  ;;  %p71_p2 = scmp.lt.s32.totalorder %s65_s15, %s65_s15 }
   0x5   :  { %p72_p3 = por %p71_p2, %p70_p1 }
   0x7   :  { %p73_p4 = pnand %p72_p3, %p66_p0 }
   0x9   :  { %76 = shalt.err (!%p73_p4)
}
   0xa   :  { %s91_s16 = smov [#allocation4]  }
   0xb   :  { %25 = dma.vmem_to_smem %s23_s14, 16, %s91_s16, [#allocation6]  }
   0xc   :  { %87 = dma.done.wait [#allocation6], 16  }
   0xd   :  { %88 = vsyncadd [#allocation6], 4294967280 }
   0xe   :  { %29 = sfence }
   0xf   :  { %s55_s19 = sadd.s32 4294967295, %s134_s0  ;;  %s77_s25 = scalar_lea.hbm %s137_s3, 16 }
  0x10   :  { %p32_p5 = scmp.gt.s32.totalorder %s55_s19, 0  ;;  %p56_p6 = scmp.lt.s32.totalorder %s55_s19, 2 }
  0x11   :  { %p78_p7 = scmp.ne.s32.totalorder %s137_s3, %s77_s25  ;;  %p81_p8 = scmp.lt.u32.totalorder %s77_s25, %s137_s3 }
  0x12   :  { %s139_s19 = smov (!%p32_p5, %s55_s19), 0 }
  0x13   :  { %s141_s19 = smov (!%p56_p6, %s139_s19), 2  ;;  %p83_p9 = pnand %p81_p8, %p78_p7 }
  0x14   :  { %s37_s2 = sld [smem:[#allocation4 + %s141_s19]] }
  0x1a   :  { %s38_s22 = smul.f32 %s37_s2, %s135_s1 }
  0x1c   :  { %40 = sst [smem:[#allocation7]] %s38_s22 }
  0x1d   :  { %86 = shalt.err (!%p83_p9)
}
  0x1e   :  { %s92_s29 = smov [#allocation7]  }
  0x1f   :  { %48 = dma.smem_to_hbm %s92_s29, 16, %s137_s3, [#allocation5]  }
  0x20   :  { %89 = dma.done.wait [#allocation5], 16  }
  0x21   :  { %90 = vsyncadd [#allocation5], 4294967280 }
  0x22   :  { %52 = sfence }
  0x23   :  { %53 = vsyncpa [#allocation5], 1 }
  0x24   :  { %54 = vsyncpa [#allocation6], 1 }

</bundles_post_ra>
